<compile_context>
chip_gen: v6e
topology: v6e:2x2x1
jax: 0.10.0
libtpu: 0.0.40
codegen_flags: <defaults>
</compile_context>

<pallas_src>
import jax
import jax.numpy as jnp
from jax.experimental import pallas as pl
from jax.experimental.pallas import tpu as pltpu


def _mish_math_f32(x):
    """mish(x) in f32 using a single exp: tanh(softplus(x)) = (e^2x + 2e^x)/(e^2x + 2e^x + 2)."""
    e = jnp.exp(jnp.minimum(x, 20.0))          # clamp so e*e never overflows f32
    num = e * (e + 2.0)                        # == (1+e)^2 - 1, cancellation-free
    y_small = x * (num / (num + 2.0))          # exact f32 divide
    # For x > 20 (torch softplus threshold): softplus(x) ~= x and tanh(x) == 1 in f32.
    return jnp.where(x > 20.0, x, y_small)


def _mish_kernel(x_ref, o_ref):
    x = x_ref[...].astype(jnp.float32)
    o_ref[...] = _mish_math_f32(x).astype(o_ref.dtype)


def mish_pallas(x: jax.Array, *, donate_input: bool = False) -> jax.Array:
    """Elementwise Mish. Any shape; flattens to a lane-dense 2D slab for the kernel."""
    orig_shape = x.shape
    dtype = x.dtype
    n = x.size
    if n == 0:
        return x

    itemsize = jnp.dtype(dtype).itemsize
    # Native packed sublane multiple: (8,128) f32, (16,128) bf16, (32,128) 1-byte.
    sub_min = {4: 8, 2: 16, 1: 32}.get(itemsize, 8)

    flat = x.reshape(-1)

    # Widest lane dim (multiple of 128) dividing n; otherwise run on the
    # 128-aligned prefix and handle the <=127-element tail with plain jnp.
    lanes = None
    for cand in (1024, 512, 256, 128):
        if n % cand == 0:
            lanes = cand
            break
    if lanes is None:
        lanes = 128
    main = n - (n % lanes)
    tail = n - main

    if main == 0:
        # Fewer than 128 elements: fused jnp is already optimal.
        return _mish_math_f32(flat.astype(jnp.float32)).astype(dtype).reshape(orig_shape)

    rows = main // lanes
    slab = flat[:main].reshape(rows, lanes)

    # ~4 MiB per block: amortizes per-step overhead on v6e/v7x; 4 buffers (in+out,
    # double-buffered) = 16 MiB + headroom, safe on every generation.
    target_bytes = 4 * 1024 * 1024
    target_rows = max(sub_min, target_bytes // (lanes * itemsize))
    target_rows = (target_rows // sub_min) * sub_min

    if rows > target_rows:
        block_rows = target_rows
    elif rows > 2 * sub_min:
        # Guarantee >=2 grid steps so the parallel axis can shard across v7x's
        # two TensorCores and DMA/compute overlap exists.
        half = pl.cdiv(rows, 2)
        block_rows = ((half + sub_min - 1) // sub_min) * sub_min
    else:
        block_rows = rows  # single block covering the full (layout-legal) array

    grid = (pl.cdiv(rows, block_rows),)
    block_bytes = block_rows * lanes * itemsize
    vmem_limit = max(32 * 1024 * 1024, 4 * block_bytes + (4 << 20))

    main_out = pl.pallas_call(
        _mish_kernel,
        out_shape=jax.ShapeDtypeStruct((rows, lanes), dtype),
        grid=grid,
        in_specs=[pl.BlockSpec((block_rows, lanes), lambda i: (i, 0))],
        out_specs=pl.BlockSpec((block_rows, lanes), lambda i: (i, 0)),
        compiler_params=pltpu.CompilerParams(
            dimension_semantics=("parallel",),
            vmem_limit_bytes=vmem_limit,
        ),
        cost_estimate=pl.CostEstimate(
            flops=8 * main,
            transcendentals=main,
            bytes_accessed=2 * main * itemsize,
        ),
        input_output_aliases=({0: 0} if donate_input else {}),
    )(slab)

    out_flat = main_out.reshape(-1)
    if tail:
        tail_out = _mish_math_f32(flat[main:].astype(jnp.float32)).astype(dtype)
        out_flat = jnp.concatenate([out_flat, tail_out])
    return out_flat.reshape(orig_shape)


def _mish_ref(x):
    xf = x.astype(jnp.float32)
    return (xf * jnp.tanh(jax.nn.softplus(xf))).astype(x.dtype)


if __name__ == "__main__":
    key = jax.random.PRNGKey(0)

    # NCHW activation tensor, like the PyTorch module would see from a conv stack.
    x = jax.random.normal(key, (2, 4, 16, 16), dtype=jnp.float32) * 3.0
    y = jax.block_until_ready(mish_pallas(x))
    y_ref = _mish_ref(x)
    assert y.shape == x.shape and y.dtype == x.dtype
    assert jnp.allclose(y, y_ref, atol=1e-5, rtol=1e-5), "mismatch vs reference (normal input)"

    # Wide-range check, including the softplus fast-path region (|x| up to 30).
    x2 = jnp.linspace(-30.0, 30.0, 4096, dtype=jnp.float32).reshape(4, 32, 32)
    y2 = jax.block_until_ready(mish_pallas(x2))
    assert jnp.allclose(y2, _mish_ref(x2), atol=1e-5, rtol=1e-5), "mismatch vs reference (range)"

    # Non-multiple-of-128 element count exercises the aligned-prefix + jnp-tail path.
    x3 = jax.random.normal(jax.random.PRNGKey(1), (2, 3, 17, 16), dtype=jnp.float32) * 2.0
    y3 = jax.block_until_ready(mish_pallas(x3))
    assert y3.shape == x3.shape
    assert jnp.allclose(y3, _mish_ref(x3), atol=1e-5, rtol=1e-5), "mismatch vs reference (ragged)"

    print("KERNEL_OK")
</pallas_src>

<mosaic_0001>
module attributes {stable_mosaic.version = 11 : i64} {
  func.func @_mish_kernel(%arg0: i32, %arg1: memref<2x1024xf32, #tpu.memory_space<vmem>>, %arg2: memref<2x1024xf32, #tpu.memory_space<vmem>>) attributes {dimension_semantics = [#tpu.dimension_semantics<parallel>], iteration_bounds = array<i64: 1>, scalar_prefetch = 0 : i64, scratch_operands = 0 : i64, tpu.core_type = #tpu.core_type<tc>, window_params = [{transform_indices = @transform_0, window_bounds = array<i64: 2, 1024>}, {transform_indices = @transform_1, window_bounds = array<i64: 2, 1024>}]} {
    %c0 = arith.constant 0 : index
    %c0_0 = arith.constant 0 : index
    %0 = vector.load %arg1[%c0, %c0_0] : memref<2x1024xf32, #tpu.memory_space<vmem>>, vector<2x1024xf32>
    %cst = arith.constant 2.000000e+01 : f32
    %1 = vector.broadcast %cst : f32 to vector<2x1024xf32>
    %2 = arith.minimumf %0, %1 : vector<2x1024xf32>
    %3 = math.exp %2 : vector<2x1024xf32>
    %cst_1 = arith.constant 2.000000e+00 : f32
    %4 = vector.broadcast %cst_1 : f32 to vector<2x1024xf32>
    %5 = arith.addf %3, %4 : vector<2x1024xf32>
    %6 = arith.mulf %3, %5 : vector<2x1024xf32>
    %cst_2 = arith.constant 2.000000e+00 : f32
    %7 = vector.broadcast %cst_2 : f32 to vector<2x1024xf32>
    %8 = arith.addf %6, %7 : vector<2x1024xf32>
    %9 = arith.divf %6, %8 : vector<2x1024xf32>
    %10 = arith.mulf %0, %9 : vector<2x1024xf32>
    %cst_3 = arith.constant 2.000000e+01 : f32
    %11 = vector.broadcast %cst_3 : f32 to vector<2x1024xf32>
    %12 = arith.cmpf ogt, %0, %11 : vector<2x1024xf32>
    %13 = arith.select %12, %0, %10 : vector<2x1024xi1>, vector<2x1024xf32>
    %c0_4 = arith.constant 0 : index
    %c0_5 = arith.constant 0 : index
    %14 = vector.load %arg2[%c0_4, %c0_5] : memref<2x1024xf32, #tpu.memory_space<vmem>>, vector<2x1024xf32>
    tpu.vector_store %arg2[%c0_4, %c0_5], %13 {strides = array<i32>} : memref<2x1024xf32, #tpu.memory_space<vmem>>, vector<2x1024xf32>,
    return
  }
  func.func @transform_0(%arg0: i32) -> (i32, i32) {
    %c0_i32 = arith.constant 0 : i32
    %c0_i32_0 = arith.constant 0 : i32
    return %arg0, %c0_i32 : i32, i32
  }
  func.func @transform_1(%arg0: i32) -> (i32, i32) {
    %c0_i32 = arith.constant 0 : i32
    %c0_i32_0 = arith.constant 0 : i32
    return %arg0, %c0_i32 : i32, i32
  }
}

</mosaic_0001>

<bundles_post_ra>
// kernel: tpu_custom_call.1
= control target key start
LH: loop header
LB: loop body
LE: loop exit
PB: predicated region body
PF: predicated region fallthrough
CT: control target
= control target key end

     0   :  { %6 = vsyncpa [#allocation3], 0  ;;  %s134_s0 = inlined_call_operand.hbm [shape: f32[2,1024], index: 0, kind: input, shape index: {}]   ;;  %s135_s1 = inlined_call_operand.hbm [shape: f32[2,1024], index: 1, kind: output, shape index: {}]  }
   0x1   :  { %7 = vsyncpa [#allocation4], 0  ;;  %s116_s6 = smov [#allocation2]  }
   0x2   :  { %s14_s7 = sshll.u32 %s116_s6, 4  ;;  %s15_s7 = int_to_ptr.vmem [resolvable:$true] %s14_s7 }
   0x3   :  { %s80_s8 = scalar_lea.vmem %s15_s7, 256  ;;  %p85_p1 = scmp.lt.s32.totalorder %s15_s7, %s15_s7 }
   0x4   :  { %p81_p0 = scmp.ne.s32.totalorder %s15_s7, %s80_s8  ;;  %p86_p2 = scmp.lt.s32.totalorder %s80_s8, %s80_s8 }
   0x6   :  { %p87_p3 = por %p86_p2, %p85_p1 }
   0x8   :  { %p88_p4 = pnand %p87_p3, %p81_p0 }
   0xa   :  { %91 = shalt.err (!%p88_p4)
}
   0xb   :  { %17 = dma.hbm_to_vmem [thread:$0]  %s134_s0, 256, %s15_s7, [#allocation3]  }
   0xc   :  { %112 = dma.done.wait [#allocation3], 256  }
   0xd   :  { %113 = vsyncadd [#allocation3], 4294967040  ;;  %v21_v0 = vld [vmem:[#allocation2] sm:$0xff]  ;;  %v22_v1 = vld [vmem:[#allocation2 + $0x8] sm:$0xff]  ;;  %s117_s0 = smov [#allocation5]  }
   0xe   :  { %v23_v2 = vmin.f32 %v21_v0, 20.0  ;;  %v24_v3 = vmin.f32 %v22_v1, 20.0  ;;  %vm41_vm0 = vcmp.gt.f32.partialorder %v21_v0, 20.0  ;;  %s53_s11 = sshll.u32 %s117_s0, 4  ;;  %vm42_vm1 = vcmp.gt.f32.partialorder %v22_v1, 20.0  ;;  %s54_s11 = int_to_ptr.vmem [resolvable:$true] %s53_s11 }
   0xf   :  { %s92_s12 = scalar_lea.vmem %s54_s11, 256  ;;  %p97_p6 = scmp.lt.s32.totalorder %s54_s11, %s54_s11 }
  0x10   :  { %v25_v4 = vmul.f32 1.442695, %v23_v2  ;;  %v27_v5 = vmul.f32 1.442695, %v24_v3  ;;  %p93_p5 = scmp.ne.s32.totalorder %s54_s11, %s92_s12  ;;  %p98_p7 = scmp.lt.s32.totalorder %s92_s12, %s92_s12 }
  0x12   :  { %64 = vpow2.f32 %v25_v4  ;;  %p99_p8 = por %p98_p7, %p97_p6 }
  0x13   :  { %66 = vpow2.f32 %v27_v5 }
  0x14   :  { %p100_p9 = pnand %p99_p8, %p93_p5 }
  0x1f   :  { %v65_v6 = vpop.eup %64 }
  0x20   :  { %v67_v7 = vpop.eup %66  ;;  %v29_v8 = vadd.f32 2.0, %v65_v6 }
  0x21   :  { %v30_v9 = vadd.f32 2.0, %v67_v7 }
  0x22   :  { %v31_v10 = vmul.f32 %v65_v6, %v29_v8 }
  0x23   :  { %v32_v11 = vmul.f32 %v67_v7, %v30_v9 }
  0x24   :  { %v33_v12 = vadd.f32 2.0, %v31_v10 }
  0x25   :  { %v34_v13 = vadd.f32 2.0, %v32_v11 }
  0x26   :  { %68 = vrcp.f32 %v33_v12 }
  0x27   :  { %70 = vrcp.f32 %v34_v13 }
  0x33   :  { %v69_v14 = vpop.eup %68 }
  0x34   :  { %v71_v15 = vpop.eup %70  ;;  %v36_v16 = vmul.f32 %v69_v14, %v31_v10 }
  0x35   :  { %v38_v17 = vmul.f32 %v71_v15, %v32_v11 }
  0x36   :  { %v39_v18 = vmul.f32 %v36_v16, %v21_v0 }
  0x37   :  { %v40_v19 = vmul.f32 %v38_v17, %v22_v1 }
  0x38   :  { %v43_v20 = vsel %vm41_vm0, %v21_v0, %v39_v18 }
  0x39   :  { %45 = vst [vmem:[#allocation5] sm:$0xff] %v43_v20  ;;  %v44_v21 = vsel %vm42_vm1, %v22_v1, %v40_v19 }
  0x3a   :  { %46 = vst [vmem:[#allocation5 + $0x8] sm:$0xff] %v44_v21 }
  0x3b   :  { %103 = shalt.err (!%p100_p9)
}
  0x3c   :  { %56 = dma.vmem_to_hbm [thread:$0]  %s54_s11, 256, %s135_s1, [#allocation4]  }
  0x3d   :  { %114 = dma.done.wait [#allocation4], 256  }
  0x3e   :  { %115 = vsyncadd [#allocation4], 4294967040 }
  0x3f   :  { %60 = vsyncpa [#allocation3], 1 }
  0x40   :  { %61 = vsyncpa [#allocation4], 1 }

</bundles_post_ra>
